<compile_context>
chip_gen: v6e
topology: v6e:2x2x1
jax: 0.10.0
libtpu: 0.0.40
codegen_flags: <defaults>
</compile_context>

<pallas_src>
import math
import jax
import jax.numpy as jnp
from jax.experimental import pallas as pl
from jax.experimental.pallas import tpu as pltpu


def encoder_kernel(x_ref, w1_ref, b123_ref, w2_ref, w3_ref,
                   whead_ref, bhead_ref, out_ref):
    x = x_ref[...]                                   # (TB, D)
    b = b123_ref[...]                                # (3, H) stacked biases

    # Linear + Tanh stack (BatchNorm already folded into w1/b1).
    h = jnp.tanh(jnp.dot(x, w1_ref[...],
                         preferred_element_type=jnp.float32) + b[0:1, :])
    h = jnp.tanh(jnp.dot(h, w2_ref[...],
                         preferred_element_type=jnp.float32) + b[1:2, :])
    h = jnp.tanh(jnp.dot(h, w3_ref[...],
                         preferred_element_type=jnp.float32) + b[2:3, :])

    # Fused output heads: [z_loc | z_log_scale] in one (H, 2L) matmul.
    out_ref[...] = (jnp.dot(h, whead_ref[...],
                            preferred_element_type=jnp.float32)
                    + bhead_ref[...])


def encoder_forward(x, kparams, *, tb=None):
    """Run the fused encoder kernel. Returns (loc, log_scale)."""
    B, D = x.shape
    H = kparams["w1"].shape[1]
    L2 = kparams["w_head"].shape[1]          # 2 * latent_size
    L = L2 // 2

    if tb is None:
        tb = B                               # single grid step by default
    assert B % tb == 0
    n_steps = B // tb

    # x / output tiled over batch; all weights/biases are a single full block.
    x_spec = pl.BlockSpec((tb, D), lambda i: (i, 0))
    out_spec = pl.BlockSpec((tb, L2), lambda i: (i, 0))

    def full(arr):
        return pl.BlockSpec(arr.shape, lambda i: (0, 0))

    out = pl.pallas_call(
        encoder_kernel,
        out_shape=jax.ShapeDtypeStruct((B, L2), jnp.float32),
        grid=(n_steps,),
        in_specs=[x_spec,
                  full(kparams["w1"]), full(kparams["b123"]),
                  full(kparams["w2"]), full(kparams["w3"]),
                  full(kparams["w_head"]), full(kparams["b_head"])],
        out_specs=out_spec,
        compiler_params=pltpu.CompilerParams(
            dimension_semantics=(
                ("arbitrary",) if n_steps == 1 else ("parallel",))),
    )(x,
      kparams["w1"], kparams["b123"],
      kparams["w2"], kparams["w3"],
      kparams["w_head"], kparams["b_head"])

    return out[:, :L], out[:, L:]


def xavier_uniform(key, fan_in, fan_out, gain):
    bound = gain * math.sqrt(6.0 / (fan_in + fan_out))
    return jax.random.uniform(key, (fan_in, fan_out), jnp.float32,
                              minval=-bound, maxval=bound)


def make_raw_params(key, D, H, L):
    """Raw module parameters (matching PyTorch init + eval-mode BN stats)."""
    gain_tanh = 5.0 / 3.0           # nn.init.calculate_gain('tanh')
    ks = jax.random.split(key, 5)
    return {
        # BatchNorm1d(D) eval affine: gamma=1, beta=0, running_mean=0,
        # running_var=1, eps=1e-5  ->  x * scale + shift
        "bn_scale": jnp.full((1, D), 1.0 / math.sqrt(1.0 + 1e-5), jnp.float32),
        "bn_shift": jnp.zeros((1, D), jnp.float32),
        "w1": xavier_uniform(ks[0], D, H, gain_tanh),
        "b1": jnp.full((1, H), 0.01, jnp.float32),
        "w2": xavier_uniform(ks[1], H, H, gain_tanh),
        "b2": jnp.full((1, H), 0.01, jnp.float32),
        "w3": xavier_uniform(ks[2], H, H, gain_tanh),
        "b3": jnp.full((1, H), 0.01, jnp.float32),
        "wloc": xavier_uniform(ks[3], H, L, 1.0),
        "bloc": jnp.full((1, L), 0.01, jnp.float32),
        "wls": xavier_uniform(ks[4], H, L, 1.0),
        "bls": jnp.full((1, L), 0.01, jnp.float32),
    }


def fold_params(p):
    """Fold BN into linear-1, fuse heads, stack hidden biases (exact fold)."""
    # If real trained running stats are loaded, recompute bn_scale/bn_shift
    # from them before calling this (scale = gamma/sqrt(var+eps),
    # shift = beta - mean*scale); the fold below stays exact.
    w1 = p["bn_scale"].reshape(-1, 1) * p["w1"]          # (D, H)
    b1 = p["bn_shift"] @ p["w1"] + p["b1"]               # (1, H)
    return {
        "w1": w1,
        "w2": p["w2"],
        "w3": p["w3"],
        "b123": jnp.concatenate([b1, p["b2"], p["b3"]], axis=0),     # (3, H)
        "w_head": jnp.concatenate([p["wloc"], p["wls"]], axis=1),    # (H, 2L)
        "b_head": jnp.concatenate([p["bloc"], p["bls"]], axis=1),    # (1, 2L)
    }


def encoder_ref(x, p):
    """Pure-JAX reference using the raw (unfolded) parameters."""
    h = x * p["bn_scale"] + p["bn_shift"]
    h = jnp.tanh(h @ p["w1"] + p["b1"])
    h = jnp.tanh(h @ p["w2"] + p["b2"])
    h = jnp.tanh(h @ p["w3"] + p["b3"])
    return h @ p["wloc"] + p["bloc"], h @ p["wls"] + p["bls"]


if __name__ == "__main__":
    # small shapes consistent with the module:
    #   len(prob_model)=6 features, hidden_size=32, latent_size=16, batch=16
    B, D, H, L = 16, 6, 32, 16
    key = jax.random.PRNGKey(0)
    kx, kp = jax.random.split(key)
    x = jax.random.normal(kx, (B, D), jnp.float32)

    raw_params = make_raw_params(kp, D, H, L)
    kernel_params = fold_params(raw_params)

    # TODO(synk): Dropout and BatchNorm training-mode (batch-statistics)
    # behavior are stochastic / stateful; this kernel implements the
    # deterministic eval-mode forward pass.

    loc, log_scale = encoder_forward(x, kernel_params)
    jax.block_until_ready((loc, log_scale))

    loc_ref, ls_ref = encoder_ref(x, raw_params)
    assert jnp.allclose(loc, loc_ref, atol=1e-5, rtol=1e-5)
    assert jnp.allclose(log_scale, ls_ref, atol=1e-5, rtol=1e-5)

    print("KERNEL_OK")
</pallas_src>

<mosaic_0001>
module attributes {stable_mosaic.version = 11 : i64} {
  func.func @encoder_kernel(%arg0: i32, %arg1: memref<16x6xf32, #tpu.memory_space<vmem>>, %arg2: memref<6x32xf32, #tpu.memory_space<vmem>>, %arg3: memref<3x32xf32, #tpu.memory_space<vmem>>, %arg4: memref<32x32xf32, #tpu.memory_space<vmem>>, %arg5: memref<32x32xf32, #tpu.memory_space<vmem>>, %arg6: memref<32x32xf32, #tpu.memory_space<vmem>>, %arg7: memref<1x32xf32, #tpu.memory_space<vmem>>, %arg8: memref<16x32xf32, #tpu.memory_space<vmem>>) attributes {dimension_semantics = [#tpu.dimension_semantics<arbitrary>], iteration_bounds = array<i64: 1>, scalar_prefetch = 0 : i64, scratch_operands = 0 : i64, tpu.core_type = #tpu.core_type<tc>, window_params = [{transform_indices = @transform_0, window_bounds = array<i64: 16, 6>}, {pipeline_mode = #tpu.pipeline_mode<synchronous>, transform_indices = @transform_1, window_bounds = array<i64: 6, 32>}, {pipeline_mode = #tpu.pipeline_mode<synchronous>, transform_indices = @transform_2, window_bounds = array<i64: 3, 32>}, {pipeline_mode = #tpu.pipeline_mode<synchronous>, transform_indices = @transform_3, window_bounds = array<i64: 32, 32>}, {pipeline_mode = #tpu.pipeline_mode<synchronous>, transform_indices = @transform_4, window_bounds = array<i64: 32, 32>}, {pipeline_mode = #tpu.pipeline_mode<synchronous>, transform_indices = @transform_5, window_bounds = array<i64: 32, 32>}, {pipeline_mode = #tpu.pipeline_mode<synchronous>, transform_indices = @transform_6, window_bounds = array<i64: 1, 32>}, {transform_indices = @transform_7, window_bounds = array<i64: 16, 32>}]} {
    %c0 = arith.constant 0 : index
    %c0_0 = arith.constant 0 : index
    %0 = vector.load %arg1[%c0, %c0_0] : memref<16x6xf32, #tpu.memory_space<vmem>>, vector<16x6xf32>
    %c0_1 = arith.constant 0 : index
    %c0_2 = arith.constant 0 : index
    %1 = vector.load %arg3[%c0_1, %c0_2] : memref<3x32xf32, #tpu.memory_space<vmem>>, vector<3x32xf32>
    %c0_3 = arith.constant 0 : index
    %c0_4 = arith.constant 0 : index
    %2 = vector.load %arg2[%c0_3, %c0_4] : memref<6x32xf32, #tpu.memory_space<vmem>>, vector<6x32xf32>
    %cst = arith.constant dense<0.000000e+00> : vector<16x32xf32>
    %3 = tpu.matmul %0, %2, %cst {dimension_numbers = #tpu.dot_dimension_numbers<[1], [0], [0], [1], [0, 0, 1, 1], [], []>} : vector<16x6xf32>, vector<6x32xf32>, vector<16x32xf32> -> vector<16x32xf32>
    %4 = vector.extract_strided_slice %1 {offsets = [0, 0], sizes = [1, 32], strides = [1, 1]} : vector<3x32xf32> to vector<1x32xf32>
    %5 = vector.broadcast %4 : vector<1x32xf32> to vector<16x32xf32>
    %6 = arith.addf %3, %5 : vector<16x32xf32>
    %7 = math.tanh %6 : vector<16x32xf32>
    %c0_5 = arith.constant 0 : index
    %c0_6 = arith.constant 0 : index
    %8 = vector.load %arg4[%c0_5, %c0_6] : memref<32x32xf32, #tpu.memory_space<vmem>>, vector<32x32xf32>
    %cst_7 = arith.constant dense<0.000000e+00> : vector<16x32xf32>
    %9 = tpu.matmul %7, %8, %cst_7 {dimension_numbers = #tpu.dot_dimension_numbers<[1], [0], [0], [1], [0, 0, 1, 1], [], []>} : vector<16x32xf32>, vector<32x32xf32>, vector<16x32xf32> -> vector<16x32xf32>
    %10 = vector.extract_strided_slice %1 {offsets = [1, 0], sizes = [1, 32], strides = [1, 1]} : vector<3x32xf32> to vector<1x32xf32>
    %11 = vector.broadcast %10 : vector<1x32xf32> to vector<16x32xf32>
    %12 = arith.addf %9, %11 : vector<16x32xf32>
    %13 = math.tanh %12 : vector<16x32xf32>
    %c0_8 = arith.constant 0 : index
    %c0_9 = arith.constant 0 : index
    %14 = vector.load %arg5[%c0_8, %c0_9] : memref<32x32xf32, #tpu.memory_space<vmem>>, vector<32x32xf32>
    %cst_10 = arith.constant dense<0.000000e+00> : vector<16x32xf32>
    %15 = tpu.matmul %13, %14, %cst_10 {dimension_numbers = #tpu.dot_dimension_numbers<[1], [0], [0], [1], [0, 0, 1, 1], [], []>} : vector<16x32xf32>, vector<32x32xf32>, vector<16x32xf32> -> vector<16x32xf32>
    %16 = vector.extract_strided_slice %1 {offsets = [2, 0], sizes = [1, 32], strides = [1, 1]} : vector<3x32xf32> to vector<1x32xf32>
    %17 = vector.broadcast %16 : vector<1x32xf32> to vector<16x32xf32>
    %18 = arith.addf %15, %17 : vector<16x32xf32>
    %19 = math.tanh %18 : vector<16x32xf32>
    %c0_11 = arith.constant 0 : index
    %c0_12 = arith.constant 0 : index
    %20 = vector.load %arg6[%c0_11, %c0_12] : memref<32x32xf32, #tpu.memory_space<vmem>>, vector<32x32xf32>
    %cst_13 = arith.constant dense<0.000000e+00> : vector<16x32xf32>
    %21 = tpu.matmul %19, %20, %cst_13 {dimension_numbers = #tpu.dot_dimension_numbers<[1], [0], [0], [1], [0, 0, 1, 1], [], []>} : vector<16x32xf32>, vector<32x32xf32>, vector<16x32xf32> -> vector<16x32xf32>
    %c0_14 = arith.constant 0 : index
    %c0_15 = arith.constant 0 : index
    %22 = vector.load %arg7[%c0_14, %c0_15] : memref<1x32xf32, #tpu.memory_space<vmem>>, vector<1x32xf32>
    %23 = vector.broadcast %22 : vector<1x32xf32> to vector<16x32xf32>
    %24 = arith.addf %21, %23 : vector<16x32xf32>
    %c0_16 = arith.constant 0 : index
    %c0_17 = arith.constant 0 : index
    %25 = vector.load %arg8[%c0_16, %c0_17] : memref<16x32xf32, #tpu.memory_space<vmem>>, vector<16x32xf32>
    tpu.vector_store %arg8[%c0_16, %c0_17], %24 {strides = array<i32>} : memref<16x32xf32, #tpu.memory_space<vmem>>, vector<16x32xf32>,
    return
  }
  func.func @transform_0(%arg0: i32) -> (i32, i32) {
    %c0_i32 = arith.constant 0 : i32
    %c0_i32_0 = arith.constant 0 : i32
    return %arg0, %c0_i32 : i32, i32
  }
  func.func @transform_1(%arg0: i32) -> (i32, i32) {
    %c0_i32 = arith.constant 0 : i32
    %c0_i32_0 = arith.constant 0 : i32
    %c0_i32_1 = arith.constant 0 : i32
    return %c0_i32, %c0_i32_0 : i32, i32
  }
  func.func @transform_2(%arg0: i32) -> (i32, i32) {
    %c0_i32 = arith.constant 0 : i32
    %c0_i32_0 = arith.constant 0 : i32
    %c0_i32_1 = arith.constant 0 : i32
    return %c0_i32, %c0_i32_0 : i32, i32
  }
  func.func @transform_3(%arg0: i32) -> (i32, i32) {
    %c0_i32 = arith.constant 0 : i32
    %c0_i32_0 = arith.constant 0 : i32
    %c0_i32_1 = arith.constant 0 : i32
    return %c0_i32, %c0_i32_0 : i32, i32
  }
  func.func @transform_4(%arg0: i32) -> (i32, i32) {
    %c0_i32 = arith.constant 0 : i32
    %c0_i32_0 = arith.constant 0 : i32
    %c0_i32_1 = arith.constant 0 : i32
    return %c0_i32, %c0_i32_0 : i32, i32
  }
  func.func @transform_5(%arg0: i32) -> (i32, i32) {
    %c0_i32 = arith.constant 0 : i32
    %c0_i32_0 = arith.constant 0 : i32
    %c0_i32_1 = arith.constant 0 : i32
    return %c0_i32, %c0_i32_0 : i32, i32
  }
  func.func @transform_6(%arg0: i32) -> (i32, i32) {
    %c0_i32 = arith.constant 0 : i32
    %c0_i32_0 = arith.constant 0 : i32
    %c0_i32_1 = arith.constant 0 : i32
    return %c0_i32, %c0_i32_0 : i32, i32
  }
  func.func @transform_7(%arg0: i32) -> (i32, i32) {
    %c0_i32 = arith.constant 0 : i32
    %c0_i32_0 = arith.constant 0 : i32
    return %arg0, %c0_i32 : i32, i32
  }
}

</mosaic_0001>

<bundles_post_ra>
// kernel: tpu_custom_call.1
= control target key start
LH: loop header
LB: loop body
LE: loop exit
PB: predicated region body
PF: predicated region fallthrough
CT: control target
= control target key end

     0   :  { %12 = vsyncpa [#allocation3], 0  ;;  %s766_s0 = inlined_call_operand.vmem [shape: f32[16,6], index: 0, kind: input, shape index: {}]   ;;  %s767_s1 = inlined_call_operand.hbm [shape: f32[6,32], index: 1, kind: input, shape index: {}]   ;;  %s768_s2 = inlined_call_operand.hbm [shape: f32[3,32], index: 2, kind: input, shape index: {}]   ;;  %s769_s3 = inlined_call_operand.hbm [shape: f32[32,32], index: 3, kind: input, shape index: {}]   ;;  %s770_s4 = inlined_call_operand.hbm [shape: f32[32,32], index: 4, kind: input, shape index: {}]   ;;  %s771_s5 = inlined_call_operand.vmem [shape: f32[32,32], index: 5, kind: input, shape index: {}]   ;;  %s772_s6 = inlined_call_operand.vmem [shape: f32[1,32], index: 6, kind: input, shape index: {}]   ;;  %s773_s7 = inlined_call_operand.hbm [shape: f32[16,32], index: 7, kind: output, shape index: {}]  }
   0x1   :  { %13 = vsyncpa [#allocation6], 0 }
   0x2   :  { %14 = vsyncpa [#allocation9], 0 }
   0x3   :  { %15 = vsyncpa [#allocation4], 0  ;;  %s666_s24 = smov [#allocation5]   ;;  %s667_s26 = smov [#allocation2]  }
   0x4   :  { %s34_s25 = sshll.u32 %s666_s24, 4  ;;  %s24_s27 = sshll.u32 %s667_s26, 4  ;;  %s35_s25 = int_to_ptr.vmem [resolvable:$true] %s34_s25  ;;  %s25_s27 = int_to_ptr.vmem [resolvable:$true] %s24_s27 }
   0x5   :  { %s566_s28 = scalar_lea.vmem %s35_s25, 64  ;;  %p571_p1 = scmp.lt.s32.totalorder %s35_s25, %s35_s25 }
   0x6   :  { %p567_p0 = scmp.ne.s32.totalorder %s35_s25, %s566_s28  ;;  %p572_p2 = scmp.lt.s32.totalorder %s566_s28, %s566_s28 }
   0x8   :  { %p573_p3 = por %p572_p2, %p571_p1 }
   0xa   :  { %p574_p4 = pnand %p573_p3, %p567_p0 }
   0xc   :  { %577 = shalt.err (!%p574_p4)
}
   0xd   :  { %37 = dma.hbm_to_vmem [thread:$0]  %s768_s2, 64, %s35_s25, [#allocation6]  }
   0xe   :  { %s586_s8 = scalar_lea.vmem %s25_s27, 128  ;;  %p591_p6 = scmp.lt.s32.totalorder %s25_s27, %s25_s27 }
   0xf   :  { %p587_p5 = scmp.ne.s32.totalorder %s25_s27, %s586_s8  ;;  %p592_p7 = scmp.lt.s32.totalorder %s586_s8, %s586_s8 }
  0x11   :  { %p593_p8 = por %p592_p7, %p591_p6 }
  0x13   :  { %p594_p9 = pnand %p593_p8, %p587_p5 }
  0x15   :  { %597 = shalt.err (!%p594_p9)
}
  0x16   :  { %27 = dma.hbm_to_vmem [thread:$0]  %s767_s1, 128, %s25_s27, [#allocation3]  }
  0x17   :  { %s668_s11 = smov [#allocation7]  }
  0x18   :  { %s43_s12 = sshll.u32 %s668_s11, 4  ;;  %s44_s12 = int_to_ptr.vmem [resolvable:$true] %s43_s12 }
  0x19   :  { %s606_s13 = scalar_lea.vmem %s44_s12, 512  ;;  %p611_p11 = scmp.lt.s32.totalorder %s44_s12, %s44_s12 }
  0x1a   :  { %p607_p10 = scmp.ne.s32.totalorder %s44_s12, %s606_s13  ;;  %p612_p12 = scmp.lt.s32.totalorder %s606_s13, %s606_s13 }
  0x1c   :  { %p613_p13 = por %p612_p12, %p611_p11 }
  0x1e   :  { %p614_p0 = pnand %p613_p13, %p607_p10 }
  0x20   :  { %617 = shalt.err (!%p614_p0)
}
  0x21   :  { %s669_s2 = smov 128   ;;  %s670_s14 = smov 8  }
  0x22   :  { %49 = dma.hbm_to_vmem [thread:$0]  %s769_s3, 512, %s44_s12, [#allocation6], %s669_s2, %s669_s2, %s670_s14  }
  0x23   :  { %s671_s1 = smov [#allocation8]  }
  0x24   :  { %s55_s17 = sshll.u32 %s671_s1, 4  ;;  %s56_s17 = int_to_ptr.vmem [resolvable:$true] %s55_s17 }
  0x25   :  { %s626_s18 = scalar_lea.vmem %s56_s17, 512  ;;  %p631_p2 = scmp.lt.s32.totalorder %s56_s17, %s56_s17 }
  0x26   :  { %p627_p1 = scmp.ne.s32.totalorder %s56_s17, %s626_s18  ;;  %p632_p3 = scmp.lt.s32.totalorder %s626_s18, %s626_s18 }
  0x28   :  { %p633_p4 = por %p632_p3, %p631_p2 }
  0x2a   :  { %p634_p5 = pnand %p633_p4, %p627_p1 }
  0x2c   :  { %637 = shalt.err (!%p634_p5)
}
  0x2d   :  { %61 = dma.hbm_to_vmem [thread:$0]  %s770_s4, 512, %s56_s17, [#allocation9], %s669_s2, %s669_s2, %s670_s14  }
  0x2e   :  { %658 = dma.done.wait [#allocation3], 128  }
  0x2f   :  { %659 = vsyncadd [#allocation3], 4294967168 }
  0x30   :  { %660 = dma.done.wait [#allocation6], 576  }
  0x31   :  { %661 = vsyncadd [#allocation6], 4294966720 }
  0x32   :  { %662 = dma.done.wait [#allocation9], 512  }
  0x33   :  { %663 = vsyncadd [#allocation9], 4294966784  ;;  %vm93_vm0 = vcmask 1045504   ;;  %vm86_vm1 = vcmask 48128   ;;  %v81_v0 = vld [vmem:[#allocation2] sm:$0x3f]  ;;  %v82_v7 = vlaneseq }
  0x34   :  { %v78_v1 = vld [vmem:[%s766_s0] sm:$0xff]  ;;  %v79_v2 = vld [vmem:[%s766_s0 + $0x8] sm:$0xff]  ;;  %501 = vmatprep.subr.msk.mxu0 %vm93_vm0, %v81_v0  ;;  %v175_v5 = vld [vmem:[#allocation7 + $0x8] sm:$0xff]  ;;  %vm182_vm2 = vcmask 261120   ;;  %s672_s8 = smov [#allocation10]  }
  0x35   :  { %503 = vmatprep.mubr.msk.f32.mxu0 %vm86_vm1, %v78_v1  ;;  %502 = vmatpush3.msk.msra.mxu0 %vm93_vm0, %v81_v0  ;;  %v177_v3 = vld [vmem:[#allocation7 + $0x18] sm:$0xff]  ;;  %v176_v4 = vld [vmem:[#allocation7 + $0x10] sm:$0xff]  ;;  %v174_v6 = vld [vmem:[#allocation7] sm:$0xff]  ;;  %v83_v8 = vshrl.u32 %v82_v7, 7  ;;  %s456_s9 = sshll.u32 %s672_s8, 4  ;;  %s457_s9 = int_to_ptr.vmem [resolvable:$true] %s456_s9 }
  0x36   :  { %504 = vmatmul.mubr.msk.f32.vlgmr.msra.gmra.mxu0 %vm86_vm1, %v79_v2  ;;  %506 = vmatprep.subr.mxu1 %v177_v3  ;;  %v80_v10 = vld [vmem:[#allocation5] sm:$0x7]  ;;  %v268_v19 = vld [vmem:[#allocation8 + $0x10] sm:$0xff]  ;;  %v267_v20 = vld [vmem:[#allocation8 + $0x8] sm:$0xff]  ;;  %s638_s10 = scalar_lea.vmem %s457_s9, 256  ;;  %p643_p7 = scmp.lt.s32.totalorder %s457_s9, %s457_s9 }
  0x37   :  { %507 = vmatpush3.msra.mxu1 %v177_v3  ;;  %v84_v9 = vsub.s32 0, %v83_v8  ;;  %v269_v18 = vld [vmem:[#allocation8 + $0x18] sm:$0xff]  ;;  %v266_v21 = vld [vmem:[#allocation8] sm:$0xff]  ;;  %v180_v22 = vsub.s32 1, %v83_v8  ;;  %v360_v30 = vld [vmem:[%s771_s5 + $0x18] sm:$0xff]  ;;  %v272_v34 = vsub.s32 2, %v83_v8  ;;  %p639_p6 = scmp.ne.s32.totalorder %s457_s9, %s638_s10  ;;  %p644_p8 = scmp.lt.s32.totalorder %s638_s10, %s638_s10 }
  0x38   :  { %508 = vmatprep.subr.mxu1 %v176_v4  ;;  %517 = vmatprep.subr.mxu0 %v269_v18  ;;  %v359_v31 = vld [vmem:[%s771_s5 + $0x10] sm:$0xff]  ;;  %v358_v32 = vld [vmem:[%s771_s5 + $0x8] sm:$0xff]  ;;  %v357_v33 = vld [vmem:[%s771_s5] sm:$0xff] }
  0x39   :  { %509 = vmatpush3.msra.mxu1 %v176_v4  ;;  %v85_v11 = vrot.slane %v80_v10, %v84_v9  ;;  %518 = vmatpush3.msra.mxu0 %v269_v18  ;;  %v181_v23 = vrot.slane %v80_v10, %v180_v22  ;;  %v273_v35 = vrot.slane %v80_v10, %v272_v34  ;;  %v477_v42 = vld [vmem:[%s772_s6] ss:$0 sm:$0xff]  ;;  %p645_p9 = por %p644_p8, %p643_p7 }
  0x3a   :  { %510 = vmatprep.subr.mxu1 %v175_v5  ;;  %519 = vmatprep.subr.mxu0 %v268_v19 }
  0x3b   :  { %511 = vmatpush3.msra.mxu1 %v175_v5  ;;  %520 = vmatpush3.msra.mxu0 %v268_v19  ;;  %p646_p10 = pnand %p645_p9, %p639_p6 }
  0x3c   :  { %512 = vmatprep.subr.mxu1 %v174_v6  ;;  %521 = vmatprep.subr.mxu0 %v267_v20 }
  0x3d   :  { %513 = vmatpush3.msra.mxu1 %v174_v6  ;;  %522 = vmatpush3.msra.mxu0 %v267_v20 }
  0x3e   :  { %523 = vmatprep.subr.mxu0 %v266_v21  ;;  %528 = vmatprep.subr.mxu1 %v360_v30 }
  0x3f   :  { %524 = vmatpush3.msra.mxu0 %v266_v21 }
  0xf6   :  { %v505_v12 = vpop.f32.mrf.mxu0 }
  0xf7   :  { %v169_v13 = vadd.f32 %v505_v12, %v85_v11 }
  0xf8   :  { %v163_v14 = vpop.f32.mrf.mxu0 }
  0xf9   :  { %v164_v15 = vadd.f32 %v163_v14, %v85_v11 }
  0xfb   :  { %546 = vtanh.f32 %v164_v15 }
  0xfc   :  { %548 = vtanh.f32 %v169_v13 }
 0x108   :  { %v547_v16 = vpop.eup %546 }
 0x109   :  { %v549_v17 = vpop.eup %548  ;;  %514 = vmatprep.mubr.msk.f32.mxu1 %vm182_vm2, %v547_v16 }
 0x10a   :  { %515 = vmatmul.mubr.msk.f32.vlgmr.msra.gmra.mxu1 %vm182_vm2, %v549_v17 }
 0x10b   :  { %529 = vmatpush3.msra.mxu1 %v360_v30 }
 0x10c   :  { %530 = vmatprep.subr.mxu1 %v359_v31 }
 0x10d   :  { %531 = vmatpush3.msra.mxu1 %v359_v31 }
 0x10e   :  { %532 = vmatprep.subr.mxu1 %v358_v32 }
 0x10f   :  { %533 = vmatpush3.msra.mxu1 %v358_v32 }
 0x110   :  { %534 = vmatprep.subr.mxu1 %v357_v33 }
 0x111   :  { %535 = vmatpush3.msra.mxu1 %v357_v33 }
 0x1ca   :  { %v516_v24 = vpop.f32.mrf.mxu1 }
 0x1cb   :  { %v261_v25 = vadd.f32 %v516_v24, %v181_v23 }
 0x1cc   :  { %v255_v26 = vpop.f32.mrf.mxu1 }
 0x1cd   :  { %v256_v27 = vadd.f32 %v255_v26, %v181_v23 }
 0x1cf   :  { %550 = vtanh.f32 %v256_v27 }
 0x1d0   :  { %552 = vtanh.f32 %v261_v25 }
 0x1dc   :  { %v551_v28 = vpop.eup %550 }
 0x1dd   :  { %v553_v29 = vpop.eup %552  ;;  %525 = vmatprep.mubr.msk.f32.mxu0 %vm182_vm2, %v551_v28 }
 0x1de   :  { %526 = vmatmul.mubr.msk.f32.vlgmr.msra.gmra.mxu0 %vm182_vm2, %v553_v29 }
 0x29e   :  { %v527_v36 = vpop.f32.mrf.mxu0 }
 0x29f   :  { %v352_v37 = vadd.f32 %v527_v36, %v273_v35 }
 0x2a0   :  { %v346_v38 = vpop.f32.mrf.mxu0 }
 0x2a1   :  { %v347_v39 = vadd.f32 %v346_v38, %v273_v35 }
 0x2a3   :  { %554 = vtanh.f32 %v347_v39 }
 0x2a4   :  { %556 = vtanh.f32 %v352_v37 }
 0x2b0   :  { %v555_v40 = vpop.eup %554 }
 0x2b1   :  { %v557_v41 = vpop.eup %556  ;;  %536 = vmatprep.mubr.msk.f32.mxu1 %vm182_vm2, %v555_v40 }
 0x2b2   :  { %537 = vmatmul.mubr.msk.f32.vlgmr.msra.gmra.mxu1 %vm182_vm2, %v557_v41 }
 0x372   :  { %v538_v43 = vpop.f32.mrf.mxu1 }
 0x373   :  { %v446_v44 = vadd.f32 %v538_v43, %v477_v42 }
 0x374   :  { %v440_v45 = vpop.f32.mrf.mxu1 }
 0x375   :  { %450 = vst.msk [vmem:[#allocation10 + $0x8] sm:$0xff] %vm182_vm2, %v446_v44  ;;  %v441_v46 = vadd.f32 %v477_v42, %v440_v45 }
 0x377   :  { %449 = vst.msk [vmem:[#allocation10] sm:$0xff] %vm182_vm2, %v441_v46 }
 0x378   :  { %649 = shalt.err (!%p646_p10)
}
 0x379   :  { %462 = dma.vmem_to_hbm [thread:$0]  %s457_s9, 256, %s773_s7, [#allocation4], %s669_s2, %s669_s2, %s670_s14  }
 0x37a   :  { %664 = dma.done.wait [#allocation4], 256  }
 0x37b   :  { %665 = vsyncadd [#allocation4], 4294967040 }
 0x37c   :  { %466 = vsyncpa [#allocation3], 1 }
 0x37d   :  { %467 = vsyncpa [#allocation6], 1 }
 0x37e   :  { %468 = vsyncpa [#allocation9], 1 }
 0x37f   :  { %469 = vsyncpa [#allocation4], 1 }

</bundles_post_ra>
